<compile_context>
chip_gen: v6e
topology: v6e:2x2x1
jax: 0.10.0
libtpu: 0.0.40
codegen_flags: <defaults>
</compile_context>

<pallas_src>
import functools

import jax
import jax.numpy as jnp
from jax.experimental import pallas as pl
from jax.experimental.pallas import tpu as pltpu

# Synthetic FUNCTION_CONFIG (the original module reads FUNCTION_CONFIG['obs_dim']).
FUNCTION_CONFIG = {"obs_dim": 7}
HIDDEN_SIZES = [128, 64, 32]


def regret_net_kernel(xt_ref,
                      w0_ref, b0_ref,
                      w1_ref, b1_ref,
                      w2_ref, b2_ref,
                      w3_ref, b3_ref,
                      o_ref):
    """Full MLP forward for one batch tile, entirely in VMEM.

    xt_ref : (F, TB)         x^T block (batch on lanes), compute dtype
    wK_ref : (out_k, in_k)   PyTorch-layout weights, compute dtype
    bK_ref : (out_k, 1)      float32 biases (b3 is (1, 1))
    o_ref  : (1, TB)         float32 tanh(output), lane-dense
    """
    cdt = w0_ref.dtype  # MXU compute dtype (f32 or bf16); f32 accumulation either way

    h = jnp.dot(w0_ref[...], xt_ref[...], preferred_element_type=jnp.float32)
    h = jnp.maximum(h + b0_ref[...], 0.0)                        # (128, TB) f32

    h = jnp.dot(w1_ref[...], h.astype(cdt), preferred_element_type=jnp.float32)
    h = jnp.maximum(h + b1_ref[...], 0.0)                        # (64, TB) f32

    h = jnp.dot(w2_ref[...], h.astype(cdt), preferred_element_type=jnp.float32)
    h = jnp.maximum(h + b2_ref[...], 0.0)                        # (32, TB) f32

    # Output layer (out_features == 1): VPU multiply + XLU sublane reduction
    # instead of an N=1 MXU matmul; keeps the result lane-dense.
    out = jnp.sum(w3_ref[...].astype(jnp.float32) * h, axis=0, keepdims=True)  # (1, TB)
    o_ref[...] = jnp.tanh(out + b3_ref[...])


def init_params(key, input_size, hidden_sizes):
    """Deterministic init mirroring nn.Linear's shapes and U(+-1/sqrt(fan_in)) init.

    Returns [W0, b0, W1, b1, W2, b2, W_out, b_out] with
      Wk    : (out_k, in_k)   -- nn.Linear weight layout
      bk    : (out_k, 1)
      W_out : (in_last, 1)    -- output_layer.weight stored as a column
      b_out : (1, 1)
    """
    dims = [input_size] + list(hidden_sizes) + [1]
    params = []
    for i in range(len(dims) - 1):
        fan_in, fan_out = dims[i], dims[i + 1]
        key, kw, kb = jax.random.split(key, 3)
        bound = 1.0 / float(fan_in) ** 0.5
        w = jax.random.uniform(kw, (fan_out, fan_in), jnp.float32, -bound, bound)
        b = jax.random.uniform(kb, (fan_out, 1), jnp.float32, -bound, bound)
        if i == len(dims) - 2:          # output layer: store weight as (in, 1) column
            w = w.T
        params.append(w)
        params.append(b)
    return params


@functools.partial(jax.jit, static_argnames=("tile_b", "compute_dtype"))
def regret_network_forward(x, params, tile_b=512, compute_dtype=jnp.float32):
    """x: (B, F) float32 -> (B,) float32  == torch.tanh(output).squeeze(-1)."""
    B, F = x.shape
    w0, b0, w1, b1, w2, b2, w3, b3 = params

    # Batch tile: multiple of 128 (lane width), clamped so small batches aren't
    # over-padded.  Default 512 keeps >=2 grid steps for B >= 1024 (v7x megacore).
    tile = min(int(tile_b), ((B + 127) // 128) * 128)
    tile = max(128, (tile // 128) * 128)
    B_pad = ((B + tile - 1) // tile) * tile
    num_tiles = B_pad // tile

    if B_pad != B:
        x = jnp.pad(x, ((0, B_pad - B), (0, 0)))   # pad rows are sliced off below

    # Lane-dense layout plumbing: put the batch on the lane axis (and optionally
    # cast to bf16) outside the kernel; x has only F features per row so this is cheap.
    xt = x.T.astype(compute_dtype)                             # (F, B_pad)
    w0c, w1c, w2c, w3c = (w.astype(compute_dtype) for w in (w0, w1, w2, w3))

    def full_spec(a):
        # Full-array block (shape == array shape), constant index map -> fetched once.
        return pl.BlockSpec(a.shape, lambda i: (0, 0))

    out = pl.pallas_call(
        regret_net_kernel,
        out_shape=jax.ShapeDtypeStruct((1, B_pad), jnp.float32),
        grid_spec=pltpu.PrefetchScalarGridSpec(
            num_scalar_prefetch=0,
            grid=(num_tiles,),
            in_specs=[
                pl.BlockSpec((F, tile), lambda i: (0, i)),     # x^T batch tile
                full_spec(w0c), full_spec(b0),
                full_spec(w1c), full_spec(b1),
                full_spec(w2c), full_spec(b2),
                full_spec(w3c), full_spec(b3),
            ],
            out_specs=pl.BlockSpec((1, tile), lambda i: (0, i)),  # lane-dense output row
        ),
        compiler_params=pltpu.CompilerParams(
            dimension_semantics=("parallel",)),
    )(xt, w0c, b0, w1c, b1, w2c, b2, w3c, b3)

    return out[0, :B]   # == squeeze(-1), drops batch padding


def reference_forward(x, params):
    """Pure-JAX reference of the PyTorch forward (f32)."""
    w0, b0, w1, b1, w2, b2, w3, b3 = params
    h = jnp.maximum(x @ w0.T + b0[:, 0], 0.0)
    h = jnp.maximum(h @ w1.T + b1[:, 0], 0.0)
    h = jnp.maximum(h @ w2.T + b2[:, 0], 0.0)
    out = h @ w3 + b3[0, 0]
    return jnp.tanh(out)[:, 0]


if __name__ == "__main__":
    key = jax.random.PRNGKey(0)
    k_params, k_x = jax.random.split(key)

    input_size = FUNCTION_CONFIG["obs_dim"] + 1   # = 8
    batch = 8

    params = init_params(k_params, input_size, HIDDEN_SIZES)
    x = jax.random.normal(k_x, (batch, input_size), jnp.float32)

    y_ref = reference_forward(x, params)

    # f32 path (default): tight agreement with the reference.
    y = regret_network_forward(x, params)
    y = jax.block_until_ready(y)
    assert y.shape == (batch,)
    assert jnp.allclose(y, y_ref, atol=1e-4, rtol=1e-4), (y, y_ref)

    # bf16 input/weight path (halves dominant HBM traffic for large batches);
    # f32 accumulation keeps the error small but looser than the f32 path.
    y_bf16 = regret_network_forward(x, params, compute_dtype=jnp.bfloat16)
    y_bf16 = jax.block_until_ready(y_bf16)
    assert y_bf16.shape == (batch,)
    assert jnp.allclose(y_bf16, y_ref, atol=5e-2, rtol=0.0), (y_bf16, y_ref)

    print("KERNEL_OK")
</pallas_src>

<mosaic_0001>
module attributes {stable_mosaic.version = 11 : i64} {
  func.func @regret_net_kernel(%arg0: i32, %arg1: memref<8x128xf32, #tpu.memory_space<vmem>>, %arg2: memref<128x8xf32, #tpu.memory_space<vmem>>, %arg3: memref<128x1xf32, #tpu.memory_space<vmem>>, %arg4: memref<64x128xf32, #tpu.memory_space<vmem>>, %arg5: memref<64x1xf32, #tpu.memory_space<vmem>>, %arg6: memref<32x64xf32, #tpu.memory_space<vmem>>, %arg7: memref<32x1xf32, #tpu.memory_space<vmem>>, %arg8: memref<32x1xf32, #tpu.memory_space<vmem>>, %arg9: memref<1x1xf32, #tpu.memory_space<vmem>>, %arg10: memref<1x128xf32, #tpu.memory_space<vmem>>) attributes {dimension_semantics = [#tpu.dimension_semantics<parallel>], iteration_bounds = array<i64: 1>, scalar_prefetch = 0 : i64, scratch_operands = 0 : i64, tpu.core_type = #tpu.core_type<tc>, window_params = [{transform_indices = @transform_0, window_bounds = array<i64: 8, 128>}, {pipeline_mode = #tpu.pipeline_mode<synchronous>, transform_indices = @transform_1, window_bounds = array<i64: 128, 8>}, {pipeline_mode = #tpu.pipeline_mode<synchronous>, transform_indices = @transform_2, window_bounds = array<i64: 128, 1>}, {pipeline_mode = #tpu.pipeline_mode<synchronous>, transform_indices = @transform_3, window_bounds = array<i64: 64, 128>}, {pipeline_mode = #tpu.pipeline_mode<synchronous>, transform_indices = @transform_4, window_bounds = array<i64: 64, 1>}, {pipeline_mode = #tpu.pipeline_mode<synchronous>, transform_indices = @transform_5, window_bounds = array<i64: 32, 64>}, {pipeline_mode = #tpu.pipeline_mode<synchronous>, transform_indices = @transform_6, window_bounds = array<i64: 32, 1>}, {pipeline_mode = #tpu.pipeline_mode<synchronous>, transform_indices = @transform_7, window_bounds = array<i64: 32, 1>}, {pipeline_mode = #tpu.pipeline_mode<synchronous>, transform_indices = @transform_8, window_bounds = array<i64: 1, 1>}, {transform_indices = @transform_9, window_bounds = array<i64: 1, 128>}]} {
    %c0 = arith.constant 0 : index
    %c0_0 = arith.constant 0 : index
    %0 = vector.load %arg2[%c0, %c0_0] : memref<128x8xf32, #tpu.memory_space<vmem>>, vector<128x8xf32>
    %c0_1 = arith.constant 0 : index
    %c0_2 = arith.constant 0 : index
    %1 = vector.load %arg1[%c0_1, %c0_2] : memref<8x128xf32, #tpu.memory_space<vmem>>, vector<8x128xf32>
    %cst = arith.constant dense<0.000000e+00> : vector<128x128xf32>
    %2 = tpu.matmul %0, %1, %cst {dimension_numbers = #tpu.dot_dimension_numbers<[1], [0], [0], [1], [0, 0, 1, 1], [], []>} : vector<128x8xf32>, vector<8x128xf32>, vector<128x128xf32> -> vector<128x128xf32>
    %c0_3 = arith.constant 0 : index
    %c0_4 = arith.constant 0 : index
    %3 = vector.load %arg3[%c0_3, %c0_4] : memref<128x1xf32, #tpu.memory_space<vmem>>, vector<128x1xf32>
    %4 = vector.broadcast %3 : vector<128x1xf32> to vector<128x128xf32>
    %5 = arith.addf %2, %4 : vector<128x128xf32>
    %cst_5 = arith.constant 0.000000e+00 : f32
    %6 = vector.broadcast %cst_5 : f32 to vector<128x128xf32>
    %7 = arith.maximumf %5, %6 : vector<128x128xf32>
    %c0_6 = arith.constant 0 : index
    %c0_7 = arith.constant 0 : index
    %8 = vector.load %arg4[%c0_6, %c0_7] : memref<64x128xf32, #tpu.memory_space<vmem>>, vector<64x128xf32>
    %cst_8 = arith.constant dense<0.000000e+00> : vector<64x128xf32>
    %9 = tpu.matmul %8, %7, %cst_8 {dimension_numbers = #tpu.dot_dimension_numbers<[1], [0], [0], [1], [0, 0, 1, 1], [], []>} : vector<64x128xf32>, vector<128x128xf32>, vector<64x128xf32> -> vector<64x128xf32>
    %c0_9 = arith.constant 0 : index
    %c0_10 = arith.constant 0 : index
    %10 = vector.load %arg5[%c0_9, %c0_10] : memref<64x1xf32, #tpu.memory_space<vmem>>, vector<64x1xf32>
    %11 = vector.broadcast %10 : vector<64x1xf32> to vector<64x128xf32>
    %12 = arith.addf %9, %11 : vector<64x128xf32>
    %cst_11 = arith.constant 0.000000e+00 : f32
    %13 = vector.broadcast %cst_11 : f32 to vector<64x128xf32>
    %14 = arith.maximumf %12, %13 : vector<64x128xf32>
    %c0_12 = arith.constant 0 : index
    %c0_13 = arith.constant 0 : index
    %15 = vector.load %arg6[%c0_12, %c0_13] : memref<32x64xf32, #tpu.memory_space<vmem>>, vector<32x64xf32>
    %cst_14 = arith.constant dense<0.000000e+00> : vector<32x128xf32>
    %16 = tpu.matmul %15, %14, %cst_14 {dimension_numbers = #tpu.dot_dimension_numbers<[1], [0], [0], [1], [0, 0, 1, 1], [], []>} : vector<32x64xf32>, vector<64x128xf32>, vector<32x128xf32> -> vector<32x128xf32>
    %c0_15 = arith.constant 0 : index
    %c0_16 = arith.constant 0 : index
    %17 = vector.load %arg7[%c0_15, %c0_16] : memref<32x1xf32, #tpu.memory_space<vmem>>, vector<32x1xf32>
    %18 = vector.broadcast %17 : vector<32x1xf32> to vector<32x128xf32>
    %19 = arith.addf %16, %18 : vector<32x128xf32>
    %cst_17 = arith.constant 0.000000e+00 : f32
    %20 = vector.broadcast %cst_17 : f32 to vector<32x128xf32>
    %21 = arith.maximumf %19, %20 : vector<32x128xf32>
    %c0_18 = arith.constant 0 : index
    %c0_19 = arith.constant 0 : index
    %22 = vector.load %arg8[%c0_18, %c0_19] : memref<32x1xf32, #tpu.memory_space<vmem>>, vector<32x1xf32>
    %23 = vector.broadcast %22 : vector<32x1xf32> to vector<32x128xf32>
    %24 = arith.mulf %23, %21 : vector<32x128xf32>
    %cst_20 = arith.constant dense<0.000000e+00> : vector<128xf32>
    %25 = vector.multi_reduction <add>, %24, %cst_20 [0] : vector<32x128xf32> to vector<128xf32>
    %26 = vector.shape_cast %25 : vector<128xf32> to vector<1x128xf32>
    %c0_21 = arith.constant 0 : index
    %c0_22 = arith.constant 0 : index
    %27 = vector.load %arg9[%c0_21, %c0_22] : memref<1x1xf32, #tpu.memory_space<vmem>>, vector<1x1xf32>
    %28 = vector.broadcast %27 : vector<1x1xf32> to vector<1x128xf32>
    %29 = arith.addf %26, %28 : vector<1x128xf32>
    %30 = math.tanh %29 : vector<1x128xf32>
    %c0_23 = arith.constant 0 : index
    %c0_24 = arith.constant 0 : index
    %31 = vector.load %arg10[%c0_23, %c0_24] : memref<1x128xf32, #tpu.memory_space<vmem>>, vector<1x128xf32>
    tpu.vector_store %arg10[%c0_23, %c0_24], %30 {strides = array<i32>} : memref<1x128xf32, #tpu.memory_space<vmem>>, vector<1x128xf32>,
    return
  }
  func.func @transform_0(%arg0: i32) -> (i32, i32) {
    %c0_i32 = arith.constant 0 : i32
    %c0_i32_0 = arith.constant 0 : i32
    return %c0_i32, %arg0 : i32, i32
  }
  func.func @transform_1(%arg0: i32) -> (i32, i32) {
    %c0_i32 = arith.constant 0 : i32
    %c0_i32_0 = arith.constant 0 : i32
    %c0_i32_1 = arith.constant 0 : i32
    return %c0_i32, %c0_i32_0 : i32, i32
  }
  func.func @transform_2(%arg0: i32) -> (i32, i32) {
    %c0_i32 = arith.constant 0 : i32
    %c0_i32_0 = arith.constant 0 : i32
    %c0_i32_1 = arith.constant 0 : i32
    return %c0_i32, %c0_i32_0 : i32, i32
  }
  func.func @transform_3(%arg0: i32) -> (i32, i32) {
    %c0_i32 = arith.constant 0 : i32
    %c0_i32_0 = arith.constant 0 : i32
    %c0_i32_1 = arith.constant 0 : i32
    return %c0_i32, %c0_i32_0 : i32, i32
  }
  func.func @transform_4(%arg0: i32) -> (i32, i32) {
    %c0_i32 = arith.constant 0 : i32
    %c0_i32_0 = arith.constant 0 : i32
    %c0_i32_1 = arith.constant 0 : i32
    return %c0_i32, %c0_i32_0 : i32, i32
  }
  func.func @transform_5(%arg0: i32) -> (i32, i32) {
    %c0_i32 = arith.constant 0 : i32
    %c0_i32_0 = arith.constant 0 : i32
    %c0_i32_1 = arith.constant 0 : i32
    return %c0_i32, %c0_i32_0 : i32, i32
  }
  func.func @transform_6(%arg0: i32) -> (i32, i32) {
    %c0_i32 = arith.constant 0 : i32
    %c0_i32_0 = arith.constant 0 : i32
    %c0_i32_1 = arith.constant 0 : i32
    return %c0_i32, %c0_i32_0 : i32, i32
  }
  func.func @transform_7(%arg0: i32) -> (i32, i32) {
    %c0_i32 = arith.constant 0 : i32
    %c0_i32_0 = arith.constant 0 : i32
    %c0_i32_1 = arith.constant 0 : i32
    return %c0_i32, %c0_i32_0 : i32, i32
  }
  func.func @transform_8(%arg0: i32) -> (i32, i32) {
    %c0_i32 = arith.constant 0 : i32
    %c0_i32_0 = arith.constant 0 : i32
    %c0_i32_1 = arith.constant 0 : i32
    return %c0_i32, %c0_i32_0 : i32, i32
  }
  func.func @transform_9(%arg0: i32) -> (i32, i32) {
    %c0_i32 = arith.constant 0 : i32
    %c0_i32_0 = arith.constant 0 : i32
    return %c0_i32, %arg0 : i32, i32
  }
}

</mosaic_0001>

<bundles_post_ra>
// kernel: regret_network_forward.1
= control target key start
LH: loop header
LB: loop body
LE: loop exit
PB: predicated region body
PF: predicated region fallthrough
CT: control target
= control target key end

     0   :  { %vm147_vm0 = vcmask 64512   ;;  %v880_v3 = vmov 0   ;;  %vm554_vm1 = vcmask 523264   ;;  %s1152_s0 = inlined_call_operand.vmem [shape: f32[8,128], index: 0, kind: input, shape index: {}]   ;;  %s1153_s1 = inlined_call_operand.vmem [shape: f32[128,8], index: 1, kind: input, shape index: {}]   ;;  %s1154_s8 = inlined_call_operand.<no memory space> [shape: f32[1,1], index: 8, kind: input, shape index: {}]   ;;  %s1155_s2 = inlined_call_operand.vmem [shape: f32[128,1], index: 2, kind: input, shape index: {}]   ;;  %s1156_s4 = inlined_call_operand.vmem [shape: f32[64,1], index: 4, kind: input, shape index: {}]   ;;  %s1157_s6 = inlined_call_operand.vmem [shape: f32[32,1], index: 6, kind: input, shape index: {}]   ;;  %s1158_s7 = inlined_call_operand.vmem [shape: f32[32,1], index: 7, kind: input, shape index: {}]   ;;  %s1159_s3 = inlined_call_operand.vmem [shape: f32[64,128], index: 3, kind: input, shape index: {}]   ;;  %s1160_s5 = inlined_call_operand.vmem [shape: f32[32,64], index: 5, kind: input, shape index: {}]   ;;  %s1161_s9 = inlined_call_operand.vmem [shape: f32[1,128], index: 9, kind: output, shape index: {}]  }
   0x1   :  { %v50_v0 = vld [vmem:[%s1152_s0] sm:$0xff]  ;;  %v35_v2 = vld [vmem:[%s1153_s1 + $0x8] sm:$0xff]  ;;  %876 = vset.pattern.permute.xlu0 %v880_v3  ;;  %877 = vset.pattern.permute.xlu1 %v880_v3  ;;  %v14_v4 = vstv %s1154_s8  ;;  %v36_v5 = vld [vmem:[%s1153_s1 + $0x10] sm:$0xff] }
   0x2   :  { %v34_v1 = vld [vmem:[%s1153_s1] sm:$0xff]  ;;  %783 = vmatprep.subr.mxu0 %v50_v0  ;;  %15 = vst [vmem:[#allocation2] sm:$0x1] %v14_v4  ;;  %v37_v6 = vld [vmem:[%s1153_s1 + $0x18] sm:$0xff]  ;;  %v64_v9 = vld [vmem:[%s1155_s2 + $0x68] sm:$0xff] }
   0x3   :  { %785 = vmatprep.mubr.msk.f32.mxu0 %vm147_vm0, %v34_v1  ;;  %784 = vmatpush3.msra.mxu0 %v50_v0  ;;  %v38_v7 = vld [vmem:[%s1153_s1 + $0x20] sm:$0xff]  ;;  %v66_v8 = vld [vmem:[%s1155_s2 + $0x78] sm:$0xff]  ;;  %v65_v10 = vld [vmem:[%s1155_s2 + $0x70] sm:$0xff] }
   0x4   :  { %786 = vmatmul.mubr.msk.f32.vlgmr.msra.gmra.mxu0 %vm147_vm0, %v35_v2  ;;  %144 = vperm.xlu0 %876, %v66_v8   ;;  %v39_v11 = vld [vmem:[%s1153_s1 + $0x28] sm:$0xff]  ;;  %v63_v12 = vld [vmem:[%s1155_s2 + $0x60] sm:$0xff]  ;;  %v40_v13 = vld [vmem:[%s1153_s1 + $0x30] sm:$0xff] }
   0x5   :  { %788 = vmatprep.mubr.msk.f32.mxu0 %vm147_vm0, %v36_v5  ;;  %134 = vperm.xlu1 %877, %v64_v9   ;;  %v62_v14 = vld [vmem:[%s1155_s2 + $0x58] sm:$0xff]  ;;  %v61_v16 = vld [vmem:[%s1155_s2 + $0x50] sm:$0xff]  ;;  %v42_v17 = vld [vmem:[%s1153_s1 + $0x40] sm:$0xff] }
   0x6   :  { %v41_v15 = vld [vmem:[%s1153_s1 + $0x38] sm:$0xff]  ;;  %v60_v18 = vld [vmem:[%s1155_s2 + $0x48] sm:$0xff]  ;;  %v59_v20 = vld [vmem:[%s1155_s2 + $0x40] sm:$0xff] }
   0x7   :  { %v43_v19 = vld [vmem:[%s1153_s1 + $0x48] sm:$0xff]  ;;  %v44_v21 = vld [vmem:[%s1153_s1 + $0x50] sm:$0xff]  ;;  %v58_v22 = vld [vmem:[%s1155_s2 + $0x38] sm:$0xff] }
   0x8   :  { %789 = vmatmul.mubr.msk.f32.gmra.mxu0 %vm147_vm0, %v37_v6  ;;  %139 = vperm.xlu0 %876, %v65_v10   ;;  %v45_v23 = vld [vmem:[%s1153_s1 + $0x58] sm:$0xff]  ;;  %v57_v24 = vld [vmem:[%s1155_s2 + $0x30] sm:$0xff]  ;;  %v46_v25 = vld [vmem:[%s1153_s1 + $0x60] sm:$0xff] }
   0x9   :  { %791 = vmatprep.mubr.msk.f32.mxu0 %vm147_vm0, %v38_v7  ;;  %129 = vperm.xlu1 %877, %v63_v12   ;;  %v56_v26 = vld [vmem:[%s1155_s2 + $0x28] sm:$0xff]  ;;  %v55_v28 = vld [vmem:[%s1155_s2 + $0x20] sm:$0xff]  ;;  %v48_v29 = vld [vmem:[%s1153_s1 + $0x70] sm:$0xff] }
   0xa   :  { %v47_v27 = vld [vmem:[%s1153_s1 + $0x68] sm:$0xff]  ;;  %v54_v30 = vld [vmem:[%s1155_s2 + $0x18] sm:$0xff]  ;;  %v53_v32 = vld [vmem:[%s1155_s2 + $0x10] sm:$0xff] }
   0xb   :  { %v49_v31 = vld [vmem:[%s1153_s1 + $0x78] sm:$0xff]  ;;  %v52_v33 = vld [vmem:[%s1155_s2 + $0x8] sm:$0xff]  ;;  %v51_v34 = vld [vmem:[%s1155_s2] sm:$0xff] }
   0xc   :  { %792 = vmatmul.mubr.msk.f32.gmra.mxu0 %vm147_vm0, %v39_v11  ;;  %124 = vperm.xlu0 %876, %v62_v14   ;;  %v372_v35 = vld [vmem:[%s1156_s4 + $0x38] sm:$0xff]  ;;  %v371_v36 = vld [vmem:[%s1156_s4 + $0x30] sm:$0xff]  ;;  %v370_v37 = vld [vmem:[%s1156_s4 + $0x28] sm:$0xff] }
   0xd   :  { %794 = vmatprep.mubr.msk.f32.mxu0 %vm147_vm0, %v40_v13  ;;  %119 = vperm.xlu1 %877, %v61_v16   ;;  %v369_v38 = vld [vmem:[%s1156_s4 + $0x20] sm:$0xff]  ;;  %v368_v39 = vld [vmem:[%s1156_s4 + $0x18] sm:$0xff]  ;;  %v367_v40 = vld [vmem:[%s1156_s4 + $0x10] sm:$0xff] }
   0xe   :  { %v366_v41 = vld [vmem:[%s1156_s4 + $0x8] sm:$0xff]  ;;  %v365_v42 = vld [vmem:[%s1156_s4] sm:$0xff]  ;;  %v532_v45 = vld [vmem:[%s1157_s6 + $0x10] sm:$0xff] }
   0xf   :  { %v530_v43 = vld [vmem:[%s1157_s6] sm:$0xff]  ;;  %v531_v44 = vld [vmem:[%s1157_s6 + $0x8] sm:$0xff]  ;;  %v533_v46 = vld [vmem:[%s1157_s6 + $0x18] sm:$0xff] }
  0x10   :  { %795 = vmatmul.mubr.msk.f32.gmra.mxu0 %vm147_vm0, %v41_v15  ;;  %114 = vperm.xlu0 %876, %v60_v18   ;;  %v656_v47 = vld [vmem:[%s1158_s7] sm:$0xff]  ;;  %v657_v48 = vld [vmem:[%s1158_s7 + $0x8] sm:$0xff]  ;;  %v658_v49 = vld [vmem:[%s1158_s7 + $0x10] sm:$0xff] }
  0x11   :  { %797 = vmatprep.mubr.msk.f32.mxu0 %vm147_vm0, %v42_v17  ;;  %109 = vperm.xlu1 %877, %v59_v20   ;;  %v659_v50 = vld [vmem:[%s1158_s7 + $0x18] sm:$0xff]  ;;  %v693_v51 = vld [vmem:[#allocation2] sm:$0x1] }
  0x12   :  { %v357_v52 = vld [vmem:[%s1159_s3] sm:$0xff] }
  0x13   :  { %841 = vmatprep.mubr.f32.mxu1 %v357_v52 }
  0x14   :  { %798 = vmatmul.mubr.msk.f32.gmra.mxu0 %vm147_vm0, %v43_v19  ;;  %104 = vperm.xlu0 %876, %v58_v22  }
  0x15   :  { %800 = vmatprep.mubr.msk.f32.mxu0 %vm147_vm0, %v44_v21  ;;  %99 = vperm.xlu1 %877, %v57_v24  }
  0x18   :  { %801 = vmatmul.mubr.msk.f32.gmra.mxu0 %vm147_vm0, %v45_v23  ;;  %94 = vperm.xlu0 %876, %v56_v26  }
  0x19   :  { %803 = vmatprep.mubr.msk.f32.mxu0 %vm147_vm0, %v46_v25  ;;  %89 = vperm.xlu1 %877, %v55_v28  }
  0x1c   :  { %804 = vmatmul.mubr.msk.f32.gmra.mxu0 %vm147_vm0, %v47_v27  ;;  %84 = vperm.xlu0 %876, %v54_v30  }
  0x1d   :  { %806 = vmatprep.mubr.msk.f32.mxu0 %vm147_vm0, %v48_v29  ;;  %79 = vperm.xlu1 %877, %v53_v32  }
  0x20   :  { %807 = vmatmul.mubr.msk.f32.gmra.mxu0 %vm147_vm0, %v49_v31  ;;  %74 = vperm.xlu0 %876, %v52_v33  }
  0x21   :  { %69 = vperm.xlu1 %877, %v51_v34  }
  0x24   :  { %410 = vperm.xlu0 %876, %v372_v35  }
  0x25   :  { %405 = vperm.xlu1 %877, %v371_v36  }
  0x28   :  { %400 = vperm.xlu0 %876, %v370_v37  }
  0x29   :  { %395 = vperm.xlu1 %877, %v369_v38  }
  0x2c   :  { %390 = vperm.xlu0 %876, %v368_v39  }
  0x2d   :  { %385 = vperm.xlu1 %877, %v367_v40  }
  0x30   :  { %380 = vperm.xlu0 %876, %v366_v41  }
  0x31   :  { %375 = vperm.xlu1 %877, %v365_v42  }
  0x34   :  { %536 = vperm.xlu0 %876, %v530_v43  }
  0x35   :  { %541 = vperm.xlu1 %877, %v531_v44  }
  0x38   :  { %546 = vperm.xlu0 %876, %v532_v45  }
  0x39   :  { %551 = vperm.xlu1 %877, %v533_v46  }
  0x3c   :  { %662 = vperm.xlu0 %876, %v656_v47  }
  0x3d   :  { %667 = vperm.xlu1 %877, %v657_v48  }
  0x40   :  { %672 = vperm.xlu0 %876, %v658_v49  }
  0x41   :  { %677 = vperm.xlu1 %877, %v659_v50  }
  0x44   :  { %696 = vperm.xlu0 %876, %v693_v51  }
  0x7f   :  { %v145_v59 = vpop.permute.xlu0 %144 }
  0x80   :  { %v135_v61 = vpop.permute.xlu1 %134 }
  0x83   :  { %v140_v0 = vpop.permute.xlu0 %139 }
  0x84   :  { %v130_v2 = vpop.permute.xlu1 %129 }
  0x87   :  { %v125_v5 = vpop.permute.xlu0 %124 }
  0x88   :  { %v120_v7 = vpop.permute.xlu1 %119 }
  0x8b   :  { %v115_v11 = vpop.permute.xlu0 %114 }
  0x8c   :  { %v110_v16 = vpop.permute.xlu1 %109 }
  0x8f   :  { %v105_v21 = vpop.permute.xlu0 %104 }
  0x90   :  { %v100_v24 = vpop.permute.xlu1 %99 }
  0x93   :  { %v95_v29 = vpop.permute.xlu0 %94 }
  0x94   :  { %v90_v32 = vpop.permute.xlu1 %89 }
  0x97   :  { %v85_v37 = vpop.permute.xlu0 %84 }
  0x98   :  { %v80_v40 = vpop.permute.xlu1 %79 }
  0x9b   :  { %v75_v45 = vpop.permute.xlu0 %74 }
  0x9c   :  { %v70_v48 = vpop.permute.xlu1 %69 }
  0xc4   :  { %v1100_v53 = vpop.f32.mrf.mxu0 }
  0xc5   :  { %v268_v46 = vadd.f32 %v1100_v53, %v75_v45  ;;  %v359_v53 = vld [vmem:[%s1159_s3 + $0x10] sm:$0xff] }
  0xc6   :  { %v1102_v54 = vpop.f32.mrf.mxu0 }
  0xc7   :  { %v263_v49 = vadd.f32 %v1102_v54, %v70_v48  ;;  %v342_v51 = vmax.f32 %v268_v46, 0.0  ;;  %v360_v54 = vld [vmem:[%s1159_s3 + $0x18] sm:$0xff] }
  0xc8   :  { %v1104_v55 = vpop.f32.mrf.mxu0 }
  0xc9   :  { %v278_v41 = vadd.f32 %v1104_v55, %v85_v37  ;;  %v341_v52 = vmax.f32 %v263_v49, 0.0  ;;  %v358_v55 = vld [vmem:[%s1159_s3 + $0x8] sm:$0xff] }
  0xca   :  { %v1106_v56 = vpop.f32.mrf.mxu0 }
  0xcb   :  { %v273_v43 = vadd.f32 %v1106_v56, %v80_v40  ;;  %v344_v47 = vmax.f32 %v278_v41, 0.0  ;;  %v361_v56 = vld [vmem:[%s1159_s3 + $0x20] sm:$0xff] }
  0xcc   :  { %v793_v57 = vpop.f32.mrf.mxu0 }
  0xcd   :  { %v288_v35 = vadd.f32 %v793_v57, %v95_v29  ;;  %v343_v50 = vmax.f32 %v273_v43, 0.0  ;;  %v362_v57 = vld [vmem:[%s1159_s3 + $0x28] sm:$0xff] }
  0xce   :  { %v282_v58 = vpop.f32.mrf.mxu0  ;;  %v527_v29 = vld [vmem:[%s1160_s5 + $0x8] sm:$0xff] }
  0xcf   :  { %v283_v38 = vadd.f32 %v282_v58, %v90_v32  ;;  %v346_v42 = vmax.f32 %v288_v35, 0.0  ;;  %v363_v58 = vld [vmem:[%s1159_s3 + $0x30] sm:$0xff] }
  0xd0   :  { %v796_v60 = vpop.f32.mrf.mxu0 }
  0xd1   :  { %v298_v30 = vadd.f32 %v796_v60, %v105_v21  ;;  %v345_v44 = vmax.f32 %v283_v38, 0.0  ;;  %v526_v60 = vld [vmem:[%s1160_s5] sm:$0xff] }
  0xd2   :  { %v292_v62 = vpop.f32.mrf.mxu0  ;;  %869 = vmatprep.mubr.msk.f32.mxu0 %vm554_vm1, %v526_v60 }
  0xd3   :  { %v293_v33 = vadd.f32 %v292_v62, %v100_v24  ;;  %v348_v36 = vmax.f32 %v298_v30, 0.0  ;;  %v528_v30 = vld [vmem:[%s1160_s5 + $0x10] sm:$0xff] }
  0xd4   :  { %v799_v63 = vpop.f32.mrf.mxu0 }
  0xd5   :  { %v308_v25 = vadd.f32 %v799_v63, %v115_v11  ;;  %v347_v39 = vmax.f32 %v293_v33, 0.0  ;;  %v411_v63 = vpop.permute.xlu0 %410 }
  0xd6   :  { %v302_v1 = vpop.f32.mrf.mxu0 }
  0xd7   :  { %v303_v27 = vadd.f32 %v302_v1, %v110_v16  ;;  %v350_v31 = vmax.f32 %v308_v25, 0.0  ;;  %v406_v1 = vpop.permute.xlu1 %405 }
  0xd8   :  { %v802_v3 = vpop.f32.mrf.mxu0 }
  0xd9   :  { %v318_v19 = vadd.f32 %v802_v3, %v125_v5  ;;  %v349_v34 = vmax.f32 %v303_v27, 0.0 }
  0xda   :  { %v312_v4 = vpop.f32.mrf.mxu0 }
  0xdb   :  { %v313_v22 = vadd.f32 %v312_v4, %v120_v7  ;;  %v352_v26 = vmax.f32 %v318_v19, 0.0  ;;  %v401_v4 = vpop.permute.xlu0 %400 }
  0xdc   :  { %v805_v6 = vpop.f32.mrf.mxu0 }
  0xdd   :  { %v328_v13 = vadd.f32 %v805_v6, %v135_v61  ;;  %v351_v28 = vmax.f32 %v313_v22, 0.0  ;;  %v396_v6 = vpop.permute.xlu1 %395 }
  0xde   :  { %v322_v8 = vpop.f32.mrf.mxu0 }
  0xdf   :  { %v323_v17 = vadd.f32 %v322_v8, %v130_v2  ;;  %v354_v20 = vmax.f32 %v328_v13, 0.0  ;;  %v391_v13 = vpop.permute.xlu0 %390 }
  0xe0   :  { %v808_v9 = vpop.f32.mrf.mxu0 }
  0xe1   :  { %v338_v10 = vadd.f32 %v808_v9, %v145_v59  ;;  %v353_v23 = vmax.f32 %v323_v17, 0.0  ;;  %v364_v59 = vld [vmem:[%s1159_s3 + $0x38] sm:$0xff]  ;;  %v386_v16 = vpop.permute.xlu1 %385 }
  0xe2   :  { %v332_v12 = vpop.f32.mrf.mxu0 }
  0xe3   :  { %v356_v14 = vmax.f32 %v338_v10, 0.0  ;;  %v333_v15 = vadd.f32 %v332_v12, %v140_v0  ;;  %v381_v21 = vpop.permute.xlu0 %380 }
  0xe5   :  { %v355_v18 = vmax.f32 %v333_v15, 0.0  ;;  %809 = vmatprep.subr.mxu1 %v356_v14  ;;  %v376_v24 = vpop.permute.xlu1 %375 }
  0xe6   :  { %810 = vmatpush3.msra.mxu1 %v356_v14 }
  0xe7   :  { %811 = vmatprep.subr.mxu1 %v355_v18  ;;  %v537_v32 = vpop.permute.xlu0 %536 }
  0xe8   :  { %812 = vmatpush3.msra.mxu1 %v355_v18 }
  0xe9   :  { %813 = vmatprep.subr.mxu1 %v354_v20  ;;  %v542_v33 = vpop.permute.xlu1 %541 }
  0xea   :  { %814 = vmatpush3.msra.mxu1 %v354_v20 }
  0xeb   :  { %815 = vmatprep.subr.mxu1 %v353_v23 }
  0xec   :  { %816 = vmatpush3.msra.mxu1 %v353_v23 }
  0xed   :  { %817 = vmatprep.subr.mxu1 %v352_v26  ;;  %v552_v35 = vpop.permute.xlu1 %551 }
  0xee   :  { %818 = vmatpush3.msra.mxu1 %v352_v26 }
  0xef   :  { %819 = vmatprep.subr.mxu1 %v351_v28 }
  0xf0   :  { %820 = vmatpush3.msra.mxu1 %v351_v28 }
  0xf1   :  { %821 = vmatprep.subr.mxu1 %v350_v31  ;;  %v668_v45 = vpop.permute.xlu1 %667 }
  0xf2   :  { %822 = vmatpush3.msra.mxu1 %v350_v31  ;;  %v529_v31 = vld [vmem:[%s1160_s5 + $0x18] sm:$0xff] }
  0xf3   :  { %823 = vmatprep.subr.mxu1 %v349_v34 }
  0xf4   :  { %824 = vmatpush3.msra.mxu1 %v349_v34  ;;  %v547_v34 = vpop.permute.xlu0 %546 }
  0xf5   :  { %825 = vmatprep.subr.mxu1 %v348_v36 }
  0xf6   :  { %826 = vmatpush3.msra.mxu1 %v348_v36 }
  0xf7   :  { %827 = vmatprep.subr.mxu1 %v347_v39 }
  0xf8   :  { %828 = vmatpush3.msra.mxu1 %v347_v39  ;;  %v663_v40 = vpop.permute.xlu0 %662 }
  0xf9   :  { %829 = vmatprep.subr.mxu1 %v346_v42 }
  0xfa   :  { %830 = vmatpush3.msra.mxu1 %v346_v42 }
  0xfb   :  { %831 = vmatprep.subr.mxu1 %v345_v44 }
  0xfc   :  { %832 = vmatpush3.msra.mxu1 %v345_v44 }
  0xfd   :  { %833 = vmatprep.subr.mxu1 %v344_v47 }
  0xfe   :  { %834 = vmatpush3.msra.mxu1 %v344_v47 }
  0xff   :  { %835 = vmatprep.subr.mxu1 %v343_v50 }
 0x100   :  { %836 = vmatpush3.msra.mxu1 %v343_v50 }
 0x101   :  { %837 = vmatprep.subr.mxu1 %v342_v51 }
 0x102   :  { %838 = vmatpush3.msra.mxu1 %v342_v51 }
 0x103   :  { %839 = vmatprep.subr.mxu1 %v341_v52 }
 0x104   :  { %840 = vmatpush3.msra.mxu1 %v341_v52  ;;  %v673_v52 = vpop.permute.xlu0 %672 }
 0x105   :  { %842 = vmatmul.mubr.f32.vlgmr.msra.gmra.mxu1 %v358_v55 }
 0x106   :  { %844 = vmatprep.mubr.f32.mxu1 %v359_v53 }
 0x109   :  { %845 = vmatmul.mubr.f32.gmra.mxu1 %v360_v54  ;;  %v678_v54 = vpop.permute.xlu1 %677 }
 0x10a   :  { %847 = vmatprep.mubr.f32.mxu1 %v361_v56 }
 0x10d   :  { %848 = vmatmul.mubr.f32.gmra.mxu1 %v362_v57 }
 0x10e   :  { %850 = vmatprep.mubr.f32.mxu1 %v363_v58  ;;  %v699_v58 = vlaneseq }
 0x111   :  { %851 = vmatmul.mubr.f32.gmra.mxu1 %v364_v59 }
 0x1c5   :  { %v843_v61 = vpop.f32.mrf.mxu1 }
 0x1c6   :  { %v485_v22 = vadd.f32 %v843_v61, %v381_v21  ;;  %v700_v61 = vshrl.u32 %v699_v58, 7 }
 0x1c7   :  { %v479_v62 = vpop.f32.mrf.mxu1 }
 0x1c8   :  { %v480_v25 = vadd.f32 %v479_v62, %v376_v24  ;;  %v519_v27 = vmax.f32 %v485_v22, 0.0 }
 0x1c9   :  { %v846_v0 = vpop.f32.mrf.mxu1 }
 0x1ca   :  { %v495_v17 = vadd.f32 %v846_v0, %v391_v13  ;;  %v518_v28 = vmax.f32 %v480_v25, 0.0  ;;  %v701_v0 = vsub.s32 0, %v700_v61 }
 0x1cb   :  { %v489_v2 = vpop.f32.mrf.mxu1 }
 0x1cc   :  { %v490_v19 = vadd.f32 %v489_v2, %v386_v16  ;;  %v521_v23 = vmax.f32 %v495_v17, 0.0  ;;  %v697_v2 = vpop.permute.xlu0 %696 }
 0x1cd   :  { %v849_v3 = vpop.f32.mrf.mxu1 }
 0x1ce   :  { %v505_v10 = vadd.f32 %v849_v3, %v401_v4  ;;  %v520_v26 = vmax.f32 %v490_v19, 0.0  ;;  %v702_v4 = vrot.slane %v697_v2, %v701_v0 }
 0x1cf   :  { %v499_v5 = vpop.f32.mrf.mxu1 }
 0x1d0   :  { %v500_v14 = vadd.f32 %v499_v5, %v396_v6  ;;  %v523_v18 = vmax.f32 %v505_v10, 0.0 }
 0x1d1   :  { %v852_v7 = vpop.f32.mrf.mxu1 }
 0x1d2   :  { %v515_v8 = vadd.f32 %v852_v7, %v411_v63  ;;  %v522_v20 = vmax.f32 %v500_v14, 0.0 }
 0x1d3   :  { %v509_v9 = vpop.f32.mrf.mxu1 }
 0x1d4   :  { %v525_v11 = vmax.f32 %v515_v8, 0.0  ;;  %v510_v12 = vadd.f32 %v509_v9, %v406_v1 }
 0x1d6   :  { %v524_v15 = vmax.f32 %v510_v12, 0.0  ;;  %853 = vmatprep.subr.mxu0 %v525_v11 }
 0x1d7   :  { %854 = vmatpush3.msra.mxu0 %v525_v11 }
 0x1d8   :  { %855 = vmatprep.subr.mxu0 %v524_v15 }
 0x1d9   :  { %856 = vmatpush3.msra.mxu0 %v524_v15 }
 0x1da   :  { %857 = vmatprep.subr.mxu0 %v523_v18 }
 0x1db   :  { %858 = vmatpush3.msra.mxu0 %v523_v18 }
 0x1dc   :  { %859 = vmatprep.subr.mxu0 %v522_v20 }
 0x1dd   :  { %860 = vmatpush3.msra.mxu0 %v522_v20 }
 0x1de   :  { %861 = vmatprep.subr.mxu0 %v521_v23 }
 0x1df   :  { %862 = vmatpush3.msra.mxu0 %v521_v23 }
 0x1e0   :  { %863 = vmatprep.subr.mxu0 %v520_v26 }
 0x1e1   :  { %864 = vmatpush3.msra.mxu0 %v520_v26 }
 0x1e2   :  { %865 = vmatprep.subr.mxu0 %v519_v27 }
 0x1e3   :  { %866 = vmatpush3.msra.mxu0 %v519_v27 }
 0x1e4   :  { %867 = vmatprep.subr.mxu0 %v518_v28 }
 0x1e5   :  { %868 = vmatpush3.msra.mxu0 %v518_v28 }
 0x1e6   :  { %870 = vmatmul.mubr.msk.f32.vlgmr.msra.gmra.mxu0 %vm554_vm1, %v527_v29 }
 0x1e7   :  { %872 = vmatprep.mubr.msk.f32.mxu0 %vm554_vm1, %v528_v30 }
 0x1ea   :  { %873 = vmatmul.mubr.msk.f32.gmra.mxu0 %vm554_vm1, %v529_v31 }
 0x2a6   :  { %v871_v36 = vpop.f32.mrf.mxu0 }
 0x2a7   :  { %v639_v37 = vadd.f32 %v871_v36, %v542_v33 }
 0x2a8   :  { %v633_v38 = vpop.f32.mrf.mxu0 }
 0x2a9   :  { %v634_v39 = vadd.f32 %v633_v38, %v537_v32  ;;  %v653_v42 = vmax.f32 %v639_v37, 0.0 }
 0x2aa   :  { %v874_v41 = vpop.f32.mrf.mxu0 }
 0x2ab   :  { %v652_v43 = vmax.f32 %v634_v39, 0.0  ;;  %v649_v44 = vadd.f32 %v874_v41, %v552_v35  ;;  %v681_v49 = vmul.f32 %v668_v45, %v653_v42 }
 0x2ac   :  { %v643_v46 = vpop.f32.mrf.mxu0 }
 0x2ad   :  { %v680_v47 = vmul.f32 %v663_v40, %v652_v43  ;;  %v644_v48 = vadd.f32 %v643_v46, %v547_v34  ;;  %v655_v50 = vmax.f32 %v649_v44, 0.0 }
 0x2af   :  { %v654_v51 = vmax.f32 %v644_v48, 0.0  ;;  %v684_v55 = vadd.f32 %v681_v49, %v680_v47  ;;  %v683_v56 = vmul.f32 %v678_v54, %v655_v50 }
 0x2b1   :  { %v682_v53 = vmul.f32 %v673_v52, %v654_v51 }
 0x2b3   :  { %v685_v57 = vadd.f32 %v684_v55, %v682_v53 }
 0x2b5   :  { %v686_v59 = vadd.f32 %v685_v57, %v683_v56 }
 0x2b7   :  { %v687_v60 = vrot.slane %v686_v59, 4 }
 0x2b9   :  { %v688_v62 = vadd.f32 %v687_v60, %v686_v59 }
 0x2bb   :  { %v689_v63 = vrot.slane %v688_v62, 2 }
 0x2bd   :  { %v690_v1 = vadd.f32 %v689_v63, %v688_v62 }
 0x2bf   :  { %v691_v3 = vrot.slane %v690_v1, 1 }
 0x2c1   :  { %v692_v5 = vadd.f32 %v691_v3, %v690_v1 }
 0x2c3   :  { %v703_v6 = vadd.f32 %v702_v4, %v692_v5 }
 0x2c5   :  { %878 = vtanh.f32 %v703_v6 }
 0x2d2   :  { %v879_v7 = vpop.eup %878 }
 0x2d3   :  { %705 = vst [vmem:[%s1161_s9] sm:$0x1] %v879_v7 }

</bundles_post_ra>
